<compile_context>
chip_gen: v7x
topology: tpu7x:2x2x1
jax: 0.10.0
libtpu: 0.0.40
codegen_flags: <defaults>
</compile_context>

<pallas_src>
import numpy as np
import jax
import jax.numpy as jnp
from jax.experimental import pallas as pl
from jax.experimental.pallas import tpu as pltpu


# ----------------------------------------------------------------------------
# Host-side construction (replicates MaxPoolLayer.__init__)
# ----------------------------------------------------------------------------
def _node_groups(leaf_actions):
    """unique actions -> list of leaf-index arrays, in np.unique order."""
    leaf_actions = np.array(leaf_actions, dtype=object)
    actions = np.unique(leaf_actions)
    return [np.where(leaf_actions == a)[0] for a in actions]


def _build_group_bias(leaf_actions, dtype=np.float32):
    """(G, L) additive bias: 0.0 where leaf belongs to group, -BIG elsewhere."""
    groups = _node_groups(leaf_actions)
    L = np.array(leaf_actions, dtype=object).shape[0]
    G = len(groups)
    neg = float(np.finfo(dtype).min) * 0.5  # large negative, finite
    bias = np.full((G, L), neg, dtype=dtype)
    for g, grp in enumerate(groups):
        bias[g, grp] = 0.0
    return bias


# ----------------------------------------------------------------------------
# Kernel
# ----------------------------------------------------------------------------
def _maxpool_kernel(x_ref, bias_ref, o_ref):
    # x_ref:    (TB, L)  batch tile of leaf activations (L on lanes)
    # bias_ref: (G, L)   0.0 in-group / -BIG out-of-group, in x.dtype
    # o_ref:    (G, TB)  per-group max, batch on the lane axis (dense store)
    x = x_ref[...]                                  # (TB, L)
    bias = bias_ref[...]                            # (G, L)
    G = bias_ref.shape[0]

    rows = []
    for g in range(G):                              # G is small & static: unroll
        # Out-of-group leaves get a huge negative offset, so they never win.
        vals_g = x + bias[g][None, :]               # (TB, L) — one add per element
        rows.append(jnp.max(vals_g, axis=-1))       # (TB,)   lane (XLU) reduce
    o_ref[...] = jnp.stack(rows, axis=0)            # (G, TB) single dense store


# ----------------------------------------------------------------------------
# Wrapper
# ----------------------------------------------------------------------------
def maxpool_layer(x, bias, *, batch_tile=512):
    """x: (B, L) float array, bias: (G, L) additive group bias -> (B, G)."""
    assert x.ndim == 2 and bias.ndim == 2
    if batch_tile % 128 != 0:
        raise ValueError("batch_tile must be a multiple of 128 (lane-dense output)")

    B, L = x.shape
    G = bias.shape[0]
    bias = bias.astype(x.dtype)
    bt = batch_tile

    grid = (pl.cdiv(B, bt),)  # partial last block allowed; no wrapper pad

    out_t = pl.pallas_call(
        _maxpool_kernel,
        out_shape=jax.ShapeDtypeStruct((G, B), x.dtype),
        grid_spec=pltpu.PrefetchScalarGridSpec(
            num_scalar_prefetch=0,
            grid=grid,
            in_specs=[
                pl.BlockSpec((bt, L), lambda i: (i, 0)),   # batch tile of x
                pl.BlockSpec((G, L), lambda i: (0, 0)),    # bias: resident, no re-DMA
            ],
            out_specs=pl.BlockSpec((G, bt), lambda i: (0, i)),  # lane-dense output
        ),
        compiler_params=pltpu.CompilerParams(
            dimension_semantics=("parallel",),        # batch axis shards across TCs (v7x)
            vmem_limit_bytes=32 * 1024 * 1024,        # covers v5e's 16 MiB scoped default
        ),
    )(x, bias)

    # Layout plumbing only: tiny (G, B) -> (B, G) to match the module API.
    return out_t.T


# ----------------------------------------------------------------------------
# Demo / correctness check
# ----------------------------------------------------------------------------
if __name__ == "__main__":
    # Deterministic synthetic setup: a tree with 8 leaves mapped to 4 actions.
    leaf_actions = [0, 1, 0, 2, 3, 1, 2, 0]
    groups = _node_groups(leaf_actions)
    bias = jnp.asarray(_build_group_bias(leaf_actions, np.float32))   # (4, 8)

    B, L = 200, len(leaf_actions)   # B not a multiple of the tile -> partial block path
    key = jax.random.PRNGKey(0)
    x = jax.random.normal(key, (B, L), dtype=jnp.float32)

    # batch_tile=128 keeps the demo small yet exercises 2 grid steps
    # (one full + one partial block). Default (512) is for real workloads.
    out = maxpool_layer(x, bias, batch_tile=128)
    out = jax.block_until_ready(out)

    # Pure-JAX reference replicating the torch per-group loop.
    ref = jnp.stack([jnp.max(x[:, jnp.asarray(g)], axis=1) for g in groups], axis=1)
    assert out.shape == (B, len(groups))
    np.testing.assert_allclose(np.asarray(out), np.asarray(ref), rtol=0, atol=0)

    print("KERNEL_OK")
</pallas_src>

<mosaic_0001>
module attributes {stable_mosaic.version = 11 : i64} {
  func.func @_maxpool_kernel(%arg0: i32, %arg1: memref<128x8xf32, #tpu.memory_space<vmem>>, %arg2: memref<4x8xf32, #tpu.memory_space<vmem>>, %arg3: memref<4x128xf32, #tpu.memory_space<vmem>>) attributes {dimension_semantics = [#tpu.dimension_semantics<parallel>], iteration_bounds = array<i64: 2>, scalar_prefetch = 0 : i64, scratch_operands = 0 : i64, tpu.core_type = #tpu.core_type<tc>, window_params = [{transform_indices = @transform_0, window_bounds = array<i64: 128, 8>}, {pipeline_mode = #tpu.pipeline_mode<synchronous>, transform_indices = @transform_1, window_bounds = array<i64: 4, 8>}, {transform_indices = @transform_2, window_bounds = array<i64: 4, 128>}]} {
    %c0 = arith.constant 0 : index
    %c0_0 = arith.constant 0 : index
    %0 = vector.load %arg1[%c0, %c0_0] : memref<128x8xf32, #tpu.memory_space<vmem>>, vector<128x8xf32>
    %c0_1 = arith.constant 0 : index
    %c0_2 = arith.constant 0 : index
    %1 = vector.load %arg2[%c0_1, %c0_2] : memref<4x8xf32, #tpu.memory_space<vmem>>, vector<4x8xf32>
    %2 = vector.extract_strided_slice %1 {offsets = [0, 0], sizes = [1, 8], strides = [1, 1]} : vector<4x8xf32> to vector<1x8xf32>
    %3 = vector.shape_cast %2 : vector<1x8xf32> to vector<8xf32>
    %4 = vector.shape_cast %3 : vector<8xf32> to vector<1x8xf32>
    %5 = vector.broadcast %4 : vector<1x8xf32> to vector<128x8xf32>
    %6 = arith.addf %0, %5 : vector<128x8xf32>
    %cst = arith.constant dense<0xFF800000> : vector<128xf32>
    %7 = vector.multi_reduction <maximumf>, %6, %cst [1] : vector<128x8xf32> to vector<128xf32>
    %8 = vector.extract_strided_slice %1 {offsets = [1, 0], sizes = [1, 8], strides = [1, 1]} : vector<4x8xf32> to vector<1x8xf32>
    %9 = vector.shape_cast %8 : vector<1x8xf32> to vector<8xf32>
    %10 = vector.shape_cast %9 : vector<8xf32> to vector<1x8xf32>
    %11 = vector.broadcast %10 : vector<1x8xf32> to vector<128x8xf32>
    %12 = arith.addf %0, %11 : vector<128x8xf32>
    %cst_3 = arith.constant dense<0xFF800000> : vector<128xf32>
    %13 = vector.multi_reduction <maximumf>, %12, %cst_3 [1] : vector<128x8xf32> to vector<128xf32>
    %14 = vector.extract_strided_slice %1 {offsets = [2, 0], sizes = [1, 8], strides = [1, 1]} : vector<4x8xf32> to vector<1x8xf32>
    %15 = vector.shape_cast %14 : vector<1x8xf32> to vector<8xf32>
    %16 = vector.shape_cast %15 : vector<8xf32> to vector<1x8xf32>
    %17 = vector.broadcast %16 : vector<1x8xf32> to vector<128x8xf32>
    %18 = arith.addf %0, %17 : vector<128x8xf32>
    %cst_4 = arith.constant dense<0xFF800000> : vector<128xf32>
    %19 = vector.multi_reduction <maximumf>, %18, %cst_4 [1] : vector<128x8xf32> to vector<128xf32>
    %20 = vector.extract_strided_slice %1 {offsets = [3, 0], sizes = [1, 8], strides = [1, 1]} : vector<4x8xf32> to vector<1x8xf32>
    %21 = vector.shape_cast %20 : vector<1x8xf32> to vector<8xf32>
    %22 = vector.shape_cast %21 : vector<8xf32> to vector<1x8xf32>
    %23 = vector.broadcast %22 : vector<1x8xf32> to vector<128x8xf32>
    %24 = arith.addf %0, %23 : vector<128x8xf32>
    %cst_5 = arith.constant dense<0xFF800000> : vector<128xf32>
    %25 = vector.multi_reduction <maximumf>, %24, %cst_5 [1] : vector<128x8xf32> to vector<128xf32>
    %26 = vector.shape_cast %7 : vector<128xf32> to vector<1x128xf32>
    %27 = vector.shape_cast %13 : vector<128xf32> to vector<1x128xf32>
    %28 = vector.shape_cast %19 : vector<128xf32> to vector<1x128xf32>
    %29 = vector.shape_cast %25 : vector<128xf32> to vector<1x128xf32>
    %30 = tpu.concatenate %26, %27, %28, %29 in 0 : vector<1x128xf32>, vector<1x128xf32>, vector<1x128xf32>, vector<1x128xf32> -> vector<4x128xf32>
    %c0_6 = arith.constant 0 : index
    %c0_7 = arith.constant 0 : index
    %31 = vector.load %arg3[%c0_6, %c0_7] : memref<4x128xf32, #tpu.memory_space<vmem>>, vector<4x128xf32>
    tpu.vector_store %arg3[%c0_6, %c0_7], %30 {strides = array<i32>} : memref<4x128xf32, #tpu.memory_space<vmem>>, vector<4x128xf32>,
    return
  }
  func.func @transform_0(%arg0: i32) -> (i32, i32) {
    %c0_i32 = arith.constant 0 : i32
    %c0_i32_0 = arith.constant 0 : i32
    return %arg0, %c0_i32 : i32, i32
  }
  func.func @transform_1(%arg0: i32) -> (i32, i32) {
    %c0_i32 = arith.constant 0 : i32
    %c0_i32_0 = arith.constant 0 : i32
    %c0_i32_1 = arith.constant 0 : i32
    return %c0_i32, %c0_i32_0 : i32, i32
  }
  func.func @transform_2(%arg0: i32) -> (i32, i32) {
    %c0_i32 = arith.constant 0 : i32
    %c0_i32_0 = arith.constant 0 : i32
    return %c0_i32, %arg0 : i32, i32
  }
}

</mosaic_0001>

<bundles_post_ra>
// kernel: tpu_custom_call.1
= control target key start
LH: loop header
LB: loop body
LE: loop exit
PB: predicated region body
PF: predicated region fallthrough
CT: control target
= control target key end

     0   :  { %7 = vsyncpa [#allocation3], 0  ;;  %s1712_s0 = inlined_call_operand.vmem [shape: f32[200,8], index: 0, kind: input, shape index: {}]   ;;  %s1713_s1 = inlined_call_operand.vmem [shape: f32[4,8], index: 1, kind: input, shape index: {}]   ;;  %s1714_s2 = inlined_call_operand.hbm [shape: f32[4,200], index: 2, kind: output, shape index: {}]  }
   0x1   :  { %9 = vsyncpa [#allocation3 + $0x1], 0  ;;  %s1080_s9 = smov 0   ;;  %s1082_s10 = smov 0  }
   0x2   :  { %s1084_s11 = smov 0   ;;  %s1086_s12 = smov 0  }
   0x3 LB: > { %s1101_s13 = sadd.s32 4294967295, %s1062_s12   ;;  %s950_s14 = sadd.s32 4294967294, %s1062_s12   ;;  %s1062_s12 = sphi %s1086_s12, %s1726_s12   ;;  %s1058_s11 = sphi %s1084_s11, %s1725_s11   ;;  %s1054_s10 = sphi %s1082_s10, %s1724_s10   ;;  %s1050_s9 = sphi %s1080_s9, %s1723_s9  }
   0x4   : > { %s1105_s15 = sadd.s32 1, %s1062_s12   ;;  %s69_s16 = sadd.s32 1, %s1058_s11 }
   0x5   : > { %s66_s17 = ssub.s32 %s1062_s12, %s1105_s15  ;;  %p79_p0 = scmp.ne.s32.totalorder %s1058_s11, %s1054_s10 }
   0x6   : > { %p67_p1 = scmp.eq.s32.totalorder %s66_s17, 0  ;;  %p80_p2 = scmp.eq.s32.totalorder %s1101_s13, 1 }
   0x7   : > { %p85_p3 = scmp.ne.s32.totalorder %s1054_s10, %s1050_s9  ;;  %p86_p4 = scmp.eq.s32.totalorder %s950_s14, 1 }
   0x8   : > { %s1116_s18 = scalar_select %p67_p1, %s1058_s11, %s69_s16  }
   0x9   : > { %p1118_p5 = por %p80_p2, %p79_p0  ;;  %p1122_p6 = por %p86_p4, %p85_p3 }
   0xa   : > { %p953_p7 = scmp.ge.s32.totalorder %s1062_s12, 1  ;;  %p124_p8 = scmp.lt.s32.totalorder %s1062_s12, 3 }
   0xc   : > { %p125_p9 = pnand %p953_p7, %p124_p8 }
   0xe   : > { %128 = sbr.rel (%p125_p9) target bundleno = 317 (0x13d), region = 28 }
  0x15   : > { %s955_s21 = sshll.u32 %s1101_s13, 4  ;;  %v181_v0 = vlaneseq  ;;  %v180_v2 = vld [vmem:[%s1713_s1] sm:$0xf]  ;;  %vm201_vm0 = vcmask 64512   ;;  %vm481_vm1 = vcmask 130112   ;;  %vm488_vm2 = vcmask 195712  }
  0x16   : > { %p155_p10 = scmp.lt.s32.totalorder %s955_s21, 24  ;;  %vm495_vm3 = vcmask 261312   ;;  %vm502_vm4 = vcmask 326912   ;;  %vm509_vm5 = vcmask 392512   ;;  %vm516_vm6 = vcmask 458112   ;;  %s147_s28 = sand.u32 1, %s1054_s10  }
  0x17   : > { %v1130_v1 = vshrl.u32 %v181_v0, 7  ;;  %v1229_v55 = vand.u32 127, %v181_v0  ;;  %vm523_vm7 = vcmask 523712   ;;  %vm530_vm8 = vcmask 589312   ;;  %s954_s29 = sshll.u32 %s147_s28, 2  ;;  %s958_s30 = sshll.u32 %s1101_s13, 6 }
  0x18   : > { %s1728_s21 = smov (!%p155_p10, %s955_s21), 24  ;;  %vm537_vm9 = vcmask 654912   ;;  %vm544_vm10 = vcmask 720512   ;;  %vm551_vm11 = vcmask 786112   ;;  %vm558_vm12 = vcmask 851712   ;;  %s149_s3 = scalar_lea.vmem [#allocation2], %s954_s29 }
  0x19   : > { %v183_v3 = vsub.s32 0, %v1130_v1  ;;  %s956_s24 = sshll.u32 %s1728_s21, 3  ;;  %v252_v23 = vsub.s32 1, %v1130_v1  ;;  %v320_v36 = vsub.s32 2, %v1130_v1  ;;  %v388_v37 = vsub.s32 3, %v1130_v1  ;;  %s891_s4 = sshll.u32 %s149_s3, 4  ;;  %s1670_s4 = int_to_ptr.vmem [resolvable:$true] %s891_s4 }
  0x1a   : > { %s1139_s27 = scalar_lea.vmem %s1712_s0, %s956_s24  ;;  %vm565_vm13 = vcmask 917312   ;;  %vm572_vm14 = vcmask 982912   ;;  %vm579_vm15 = vcmask 1048512   ;;  %s1668_s7 = scalar_lea.hbm %s1714_s2, %s958_s30 }
  0x1b   : > { %v184_v4 = vrot.slane %v180_v2, %v183_v3  ;;  %v1142_v5 = vld [vmem:[%s1139_s27 + $0x10] sm:$0xff]  ;;  %v1145_v6 = vld [vmem:[%s1139_s27] sm:$0xff]  ;;  %v1148_v7 = vld [vmem:[%s1139_s27 + $0x18] sm:$0xff]  ;;  %v1198_v34 = vrot.slane %v180_v2, %v252_v23  ;;  %v1221_v50 = vrot.slane %v180_v2, %v320_v36  ;;  %v1223_v51 = vrot.slane %v180_v2, %v388_v37  ;;  %s878_s8 = scalar_lea.sflag [#allocation3], %s147_s28  ;;  %s1000_s13 = scalar_lea.vmem %s1670_s4, 64 }
  0x1c   : > { %v1154_v11 = vld [vmem:[%s1139_s27 + $0x8] sm:$0xff]  ;;  %v1161_v14 = vld [vmem:[%s1139_s27 + $0x20] sm:$0xff]  ;;  %v1170_v21 = vld [vmem:[%s1139_s27 + $0x38] sm:$0xff]  ;;  %p1001_p11 = scmp.ne.s32.totalorder %s1670_s4, %s1000_s13  ;;  %s1064_s14 = smov [#allocation2]  }
  0x1d   : > { %v187_v8 = vadd.f32 %v184_v4, %v1142_v5  ;;  %v185_v9 = vadd.f32 %v184_v4, %v1145_v6  ;;  %v188_v10 = vadd.f32 %v184_v4, %v1148_v7  ;;  %v186_v12 = vadd.f32 %v184_v4, %v1154_v11  ;;  %v1158_v13 = vld [vmem:[%s1139_s27 + $0x28] sm:$0xff]  ;;  %v1173_v22 = vld [vmem:[%s1139_s27 + $0x30] sm:$0xff]  ;;  %v1184_v29 = vld [vmem:[%s1139_s27 + $0x40] sm:$0xff]  ;;  %s1004_s16 = sshll.u32 %s1064_s14, 4  ;;  %s1005_s16 = int_to_ptr.vmem [resolvable:$false] %s1004_s16 }
  0x1e   : > { %v190_v19 = vadd.f32 %v184_v4, %v1158_v13  ;;  %v189_v20 = vadd.f32 %v184_v4, %v1161_v14  ;;  %v192_v24 = vadd.f32 %v184_v4, %v1170_v21  ;;  %v191_v27 = vadd.f32 %v184_v4, %v1173_v22  ;;  %v1181_v28 = vld [vmem:[%s1139_s27 + $0x48] sm:$0xff]  ;;  %v1187_v30 = vld [vmem:[%s1139_s27 + $0x58] sm:$0xff]  ;;  %v1190_v31 = vld [vmem:[%s1139_s27 + $0x50] sm:$0xff]  ;;  %p1002_p12 = pnand %p1001_p11, %p1118_p5  ;;  %s1006_s17 = scalar_lea.vmem %s1005_s16, 128 }
  0x1f   : > { %v208_v15 = vsel %vm201_vm0, %v187_v8, -inf  ;;  %v202_v16 = vsel %vm201_vm0, %v185_v9, -inf  ;;  %v211_v17 = vsel %vm201_vm0, %v188_v10, -inf  ;;  %v205_v18 = vsel %vm201_vm0, %v186_v12, -inf  ;;  %v1193_v32 = vld [vmem:[%s1139_s27 + $0x68] sm:$0xff]  ;;  %v1196_v33 = vld [vmem:[%s1139_s27 + $0x60] sm:$0xff]  ;;  %p1007_p0 = scmp.lt.s32.totalorder %s1670_s4, %s1005_s16  ;;  %p1008_p1 = scmp.lt.s32.totalorder %s1006_s17, %s1000_s13 }
  0x20   : > { %209 = vmax.xlane.f32.xlu1 %v208_v15  ;;  %203 = vmax.xlane.f32.xlu0 %v202_v16  ;;  %v217_v25 = vsel %vm201_vm0, %v190_v19, -inf  ;;  %v214_v26 = vsel %vm201_vm0, %v189_v20, -inf  ;;  %v1201_v35 = vld [vmem:[%s1139_s27 + $0x78] sm:$0xff]  ;;  %v223_v38 = vsel %vm201_vm0, %v192_v24, -inf  ;;  %v194_v39 = vadd.f32 %v184_v4, %v1181_v28  ;;  %v1214_v46 = vld [vmem:[%s1139_s27 + $0x70] sm:$0xff]  ;;  %p1003_p13 = pneg %p1002_p12 }
  0x21   : > { %v193_v40 = vadd.f32 %v184_v4, %v1184_v29  ;;  %v196_v41 = vadd.f32 %v184_v4, %v1187_v30  ;;  %v220_v42 = vsel %vm201_vm0, %v191_v27, -inf  ;;  %v195_v43 = vadd.f32 %v184_v4, %v1190_v31  ;;  %p1009_p2 = por %p1008_p1, %p1007_p0 }
  0x22   : > { %v198_v44 = vadd.f32 %v184_v4, %v1193_v32  ;;  %v197_v45 = vadd.f32 %v184_v4, %v1196_v33  ;;  %v200_v47 = vadd.f32 %v184_v4, %v1201_v35  ;;  %v255_v48 = vadd.f32 %v1198_v34, %v1154_v11 }
  0x23   : > { %v254_v49 = vadd.f32 %v1198_v34, %v1145_v6  ;;  %v229_v52 = vsel %vm201_vm0, %v194_v39, -inf  ;;  %v226_v53 = vsel %vm201_vm0, %v193_v40, -inf  ;;  %v199_v54 = vadd.f32 %v184_v4, %v1214_v46  ;;  %p1010_p3 = pnand %p1009_p2, %p1003_p13 }
  0x24   : > { %212 = vmax.xlane.f32.xlu1 %v211_v17  ;;  %206 = vmax.xlane.f32.xlu0 %v205_v18  ;;  %v235_v56 = vsel %vm201_vm0, %v196_v41, -inf  ;;  %v232_v57 = vsel %vm201_vm0, %v195_v43, -inf  ;;  %v241_v58 = vsel %vm201_vm0, %v198_v44, -inf  ;;  %v238_v59 = vsel %vm201_vm0, %v197_v45, -inf }
  0x25   : > { %v247_v60 = vsel %vm201_vm0, %v200_v47, -inf  ;;  %v1237_v61 = vsel %vm201_vm0, %v255_v48, -inf  ;;  %v1240_v62 = vsel %vm201_vm0, %v254_v49, -inf  ;;  %v395_v63 = vadd.f32 %v1223_v51, %v1158_v13 }
  0x26   : > { %v1246_v0 = vadd.f32 %v1221_v50, %v1145_v6  ;;  %v396_v2 = vadd.f32 %v1223_v51, %v1173_v22  ;;  %v329_v3 = vadd.f32 %v1221_v50, %v1170_v21  ;;  %v330_v4 = vadd.f32 %v1221_v50, %v1184_v29 }
  0x27   : > { %v244_v8 = vsel %vm201_vm0, %v199_v54, -inf  ;;  %v1257_v9 = vadd.f32 %v1198_v34, %v1142_v5  ;;  %v1260_v10 = vsel %vm201_vm0, %v395_v63, -inf  ;;  %v263_v12 = vadd.f32 %v1198_v34, %v1181_v28 }
  0x28   : > { %218 = vmax.xlane.f32.xlu1 %v217_v25  ;;  %215 = vmax.xlane.f32.xlu0 %v214_v26  ;;  %v1265_v15 = vsel %vm201_vm0, %v396_v2, -inf  ;;  %v1268_v16 = vsel %vm201_vm0, %v329_v3, -inf  ;;  %v1271_v17 = vsel %vm201_vm0, %v330_v4, -inf  ;;  %v264_v18 = vadd.f32 %v1198_v34, %v1190_v31 }
  0x29   : > { %v1276_v19 = vsel %vm201_vm0, %v263_v12, -inf  ;;  %v397_v20 = vadd.f32 %v1223_v51, %v1170_v21  ;;  %v398_v23 = vadd.f32 %v1223_v51, %v1184_v29  ;;  %v331_v24 = vadd.f32 %v1221_v50, %v1181_v28 }
  0x2a   : > { %v1285_v25 = vsel %vm201_vm0, %v264_v18, -inf  ;;  %v332_v26 = vadd.f32 %v1221_v50, %v1190_v31  ;;  %v265_v27 = vadd.f32 %v1198_v34, %v1187_v30  ;;  %v266_v36 = vadd.f32 %v1198_v34, %v1196_v33 }
  0x2b   : > { %v1294_v37 = vsel %vm201_vm0, %v397_v20, -inf  ;;  %v1300_v39 = vsel %vm201_vm0, %v331_v24, -inf  ;;  %v399_v40 = vadd.f32 %v1223_v51, %v1181_v28  ;;  %v400_v44 = vadd.f32 %v1223_v51, %v1190_v31 }
  0x2c   : > { %224 = vmax.xlane.f32.xlu1 %v223_v38  ;;  %221 = vmax.xlane.f32.xlu0 %v220_v42  ;;  %v1297_v38 = vsel %vm201_vm0, %v398_v23, -inf  ;;  %v1305_v41 = vsel %vm201_vm0, %v332_v26, -inf  ;;  %v1308_v42 = vsel %vm201_vm0, %v265_v27, -inf  ;;  %v1311_v43 = vsel %vm201_vm0, %v266_v36, -inf }
  0x2d   : > { %v1316_v45 = vsel %vm201_vm0, %v399_v40, -inf  ;;  %v333_v47 = vadd.f32 %v1221_v50, %v1187_v30  ;;  %v334_v28 = vadd.f32 %v1221_v50, %v1196_v33  ;;  %v267_v48 = vadd.f32 %v1198_v34, %v1193_v32 }
  0x2e   : > { %v1325_v49 = vsel %vm201_vm0, %v400_v44, -inf  ;;  %v401_v31 = vadd.f32 %v1223_v51, %v1187_v30  ;;  %v335_v63 = vadd.f32 %v1221_v50, %v1193_v32  ;;  %v269_v3 = vadd.f32 %v1198_v34, %v1201_v35 }
  0x2f   : > { %v1334_v54 = vsel %vm201_vm0, %v333_v47, -inf  ;;  %v337_v4 = vadd.f32 %v1221_v50, %v1201_v35  ;;  %v403_v12 = vadd.f32 %v1223_v51, %v1193_v32  ;;  %v404_v20 = vadd.f32 %v1223_v51, %v1214_v46 }
  0x30   : > { %230 = vmax.xlane.f32.xlu1 %v229_v52  ;;  %227 = vmax.xlane.f32.xlu0 %v226_v53  ;;  %v268_v52 = vadd.f32 %v1198_v34, %v1214_v46  ;;  %v402_v53 = vadd.f32 %v1223_v51, %v1196_v33  ;;  %v1348_v30 = vsel %vm201_vm0, %v401_v31, -inf  ;;  %v405_v23 = vadd.f32 %v1223_v51, %v1201_v35 }
  0x31   : > { %v483_v24 = vadd.s32 4294967280, %v1229_v55  ;;  %v1373_v26 = vsel %vm201_vm0, %v269_v3, -inf  ;;  %v1376_v27 = vsel %vm201_vm0, %v337_v4, -inf  ;;  %v1379_v32 = vsel %vm201_vm0, %v403_v12, -inf }
  0x32   : > { %v1345_v2 = vsel %vm201_vm0, %v268_v52, -inf  ;;  %v1351_v33 = vsel %vm201_vm0, %v402_v53, -inf  ;;  %v1383_v36 = vsub.s32 %v1229_v55, %v1130_v1  ;;  %v1389_v35 = vsel %vm201_vm0, %v405_v23, -inf }
  0x33   : > { %v476_v40 = vadd.s32 4294967288, %v1229_v55  ;;  %v504_v44 = vadd.s32 4294967256, %v1229_v55  ;;  %v257_v47 = vadd.f32 %v1198_v34, %v1148_v7  ;;  %v497_v52 = vadd.s32 4294967264, %v1229_v55 }
  0x34   : > { %236 = vmax.xlane.f32.xlu1 %v235_v56  ;;  %233 = vmax.xlane.f32.xlu0 %v232_v57  ;;  %v1337_v56 = vsel %vm201_vm0, %v334_v28, -inf  ;;  %v1340_v57 = vsel %vm201_vm0, %v267_v48, -inf  ;;  %v323_v28 = vadd.f32 %v1221_v50, %v1154_v11  ;;  %v338_v31 = vsel %vm201_vm0, %v1246_v0, -inf }
  0x35   : > { %v1410_v53 = vsub.s32 %v476_v40, %v1130_v1  ;;  %v276_v3 = vsel %vm201_vm0, %v1257_v9, -inf  ;;  %v1419_v4 = vsub.s32 %v497_v52, %v1130_v1  ;;  %v525_v12 = vadd.s32 4294967232, %v1229_v55 }
  0x36   : > { %v279_v52 = vsel %vm201_vm0, %v257_v47, -inf  ;;  %v574_v47 = vadd.s32 4294967176, %v1229_v55 }
  0x37   : > { %v1439_v40 = vsub.s32 %v525_v12, %v1130_v1  ;;  %v567_v12 = vadd.s32 4294967184, %v1229_v55 }
  0x38   : > { %242 = vmax.xlane.f32.xlu1 %v241_v58  ;;  %239 = vmax.xlane.f32.xlu0 %v238_v59  ;;  %v336_v58 = vadd.f32 %v1221_v50, %v1214_v46  ;;  %v1356_v59 = vsel %vm201_vm0, %v335_v63, -inf  ;;  %v1386_v46 = vsel %vm201_vm0, %v404_v20, -inf  ;;  %v1413_v63 = vsub.s32 %v504_v44, %v1130_v1 }
  0x39   : > { %v390_v20 = vadd.f32 %v1223_v51, %v1145_v6  ;;  %1719 = vst [vmem:[#allocation5_spill] sm:$0xff] %v1439_v40  ;;  %v539_v44 = vadd.s32 4294967216, %v1229_v55  ;;  %v560_v6 = vadd.s32 4294967192, %v1229_v55 }
  0x3a   : > { %v1365_v18 = vsel %vm201_vm0, %v336_v58, -inf  ;;  %v518_v58 = vadd.s32 4294967240, %v1229_v55 }
  0x3c   : > { %248 = vmax.xlane.f32.xlu1 %v247_v60  ;;  %245 = vmax.xlane.f32.xlu0 %v244_v8  ;;  %v1392_v60 = vsub.s32 %v483_v24, %v1130_v1  ;;  %v490_v8 = vadd.s32 4294967272, %v1229_v55  ;;  %v1424_v0 = vsub.s32 %v518_v58, %v1130_v1  ;;  %v546_v24 = vadd.s32 4294967208, %v1229_v55 }
  0x3d   : > { %v341_v58 = vsel %vm201_vm0, %v323_v28, -inf  ;;  %v258_v28 = vadd.f32 %v1198_v34, %v1161_v14 }
  0x3e   : > { %v1402_v48 = vsub.s32 %v490_v8, %v1130_v1  ;;  %v324_v8 = vadd.f32 %v1221_v50, %v1142_v5 }
  0x40   : > { %274 = vmax.xlane.f32.xlu1 %v1237_v61  ;;  %271 = vmax.xlane.f32.xlu0 %v1240_v62  ;;  %v511_v61 = vadd.s32 4294967248, %v1229_v55  ;;  %v532_v62 = vadd.s32 4294967224, %v1229_v55 }
  0x42   : > { %v1430_v23 = vsub.s32 %v511_v61, %v1130_v1  ;;  %v1433_v9 = vsub.s32 %v532_v62, %v1130_v1  ;;  %v1446_v61 = vsub.s32 %v546_v24, %v1130_v1  ;;  %v1453_v62 = vsub.s32 %v560_v6, %v1130_v1 }
  0x43   : > { %v1463_v24 = vsub.s32 %v567_v12, %v1130_v1  ;;  %v344_v6 = vsel %vm201_vm0, %v324_v8, -inf  ;;  %v259_v12 = vadd.f32 %v1198_v34, %v1158_v13 }
  0x44   : > { %339 = vmax.xlane.f32.xlu1 %v338_v31  ;;  %277 = vmax.xlane.f32.xlu0 %v276_v3  ;;  %v553_v31 = vadd.s32 4294967200, %v1229_v55  ;;  %v1450_v3 = vsub.s32 %v539_v44, %v1130_v1  ;;  %1720 = vst [vmem:[#allocation6_spill] sm:$0xff] %v1453_v62  ;;  %v406_v44 = vsel %vm201_vm0, %v390_v20, -inf  ;;  %v391_v62 = vadd.f32 %v1223_v51, %v1154_v11 }
  0x45   : > { %v282_v55 = vsel %vm201_vm0, %v258_v28, -inf  ;;  %v325_v20 = vadd.f32 %v1221_v50, %v1148_v7  ;;  %v393_v28 = vadd.f32 %v1223_v51, %v1148_v7  ;;  %v328_v7 = vadd.f32 %v1221_v50, %v1173_v22 }
  0x46   : > { %v1457_v40 = vsub.s32 %v553_v31, %v1130_v1  ;;  %v1470_v31 = vsub.s32 %v574_v47, %v1130_v1  ;;  %v326_v1 = vadd.f32 %v1221_v50, %v1161_v14  ;;  %v260_v47 = vadd.f32 %v1198_v34, %v1173_v22 }
  0x47   : > { %v347_v11 = vsel %vm201_vm0, %v325_v20, -inf }
  0x48   : > { %280 = vmax.xlane.f32.xlu1 %v279_v52  ;;  %342 = vmax.xlane.f32.xlu0 %v341_v58  ;;  %v409_v52 = vsel %vm201_vm0, %v391_v62, -inf  ;;  %v392_v58 = vadd.f32 %v1223_v51, %v1142_v5  ;;  %v350_v62 = vsel %vm201_vm0, %v326_v1, -inf  ;;  %v285_v5 = vsel %vm201_vm0, %v259_v12, -inf }
  0x4a   : > { %v412_v8 = vsel %vm201_vm0, %v392_v58, -inf }
  0x4c   : > { %407 = vmax.xlane.f32.xlu1 %v406_v44  ;;  %345 = vmax.xlane.f32.xlu0 %v344_v6  ;;  %v288_v44 = vsel %vm201_vm0, %v260_v47, -inf  ;;  %v415_v6 = vsel %vm201_vm0, %v393_v28, -inf }
  0x50   : > { %283 = vmax.xlane.f32.xlu1 %v282_v55  ;;  %410 = vmax.xlane.f32.xlu0 %v409_v52  ;;  %v394_v55 = vadd.f32 %v1223_v51, %v1161_v14  ;;  %v327_v52 = vadd.f32 %v1221_v50, %v1158_v13  ;;  %v262_v13 = vadd.f32 %v1198_v34, %v1184_v29 }
  0x52   : > { %v418_v58 = vsel %vm201_vm0, %v394_v55, -inf  ;;  %v353_v20 = vsel %vm201_vm0, %v327_v52, -inf  ;;  %v294_v51 = vsel %vm201_vm0, %v262_v13, -inf }
  0x54   : > { %413 = vmax.xlane.f32.xlu1 %v412_v8  ;;  %348 = vmax.xlane.f32.xlu0 %v347_v11  ;;  %v261_v8 = vadd.f32 %v1198_v34, %v1170_v21  ;;  %v356_v11 = vsel %vm201_vm0, %v328_v7, -inf }
  0x56   : > { %v291_v14 = vsel %vm201_vm0, %v261_v8, -inf  ;;  %vm870_vm0 = vcmask 1040384  }
  0x58   : > { %351 = vmax.xlane.f32.xlu1 %v350_v62  ;;  %286 = vmax.xlane.f32.xlu0 %v285_v5 }
  0x5c   : > { %289 = vmax.xlane.f32.xlu1 %v288_v44  ;;  %416 = vmax.xlane.f32.xlu0 %v415_v6  ;;  %v1722_v44 = vld [vmem:[#allocation6_spill] sm:$0xff] }
  0x60   : > { %419 = vmax.xlane.f32.xlu1 %v418_v58  ;;  %354 = vmax.xlane.f32.xlu0 %v353_v20 }
  0x64   : > { %357 = vmax.xlane.f32.xlu1 %v356_v11  ;;  %292 = vmax.xlane.f32.xlu0 %v291_v14 }
  0x68   : > { %295 = vmax.xlane.f32.xlu1 %v294_v51  ;;  %422 = vmax.xlane.f32.xlu0 %v1260_v10 }
  0x6c   : > { %425 = vmax.xlane.f32.xlu1 %v1265_v15  ;;  %360 = vmax.xlane.f32.xlu0 %v1268_v16 }
  0x70   : > { %363 = vmax.xlane.f32.xlu1 %v1271_v17  ;;  %298 = vmax.xlane.f32.xlu0 %v1276_v19 }
  0x74   : > { %301 = vmax.xlane.f32.xlu1 %v1285_v25  ;;  %428 = vmax.xlane.f32.xlu0 %v1294_v37 }
  0x78   : > { %431 = vmax.xlane.f32.xlu1 %v1297_v38  ;;  %366 = vmax.xlane.f32.xlu0 %v1300_v39 }
  0x7c   : > { %369 = vmax.xlane.f32.xlu1 %v1305_v41  ;;  %304 = vmax.xlane.f32.xlu0 %v1308_v42 }
  0x80   : > { %307 = vmax.xlane.f32.xlu1 %v1311_v43  ;;  %434 = vmax.xlane.f32.xlu0 %v1316_v45 }
  0x84   : > { %437 = vmax.xlane.f32.xlu1 %v1325_v49  ;;  %372 = vmax.xlane.f32.xlu0 %v1334_v54 }
  0x88   : > { %375 = vmax.xlane.f32.xlu1 %v1337_v56  ;;  %310 = vmax.xlane.f32.xlu0 %v1340_v57 }
  0x8c   : > { %313 = vmax.xlane.f32.xlu1 %v1345_v2  ;;  %440 = vmax.xlane.f32.xlu0 %v1348_v30 }
  0x90   : > { %443 = vmax.xlane.f32.xlu1 %v1351_v33  ;;  %378 = vmax.xlane.f32.xlu0 %v1356_v59 }
  0x94   : > { %381 = vmax.xlane.f32.xlu1 %v1365_v18  ;;  %316 = vmax.xlane.f32.xlu0 %v1373_v26  ;;  %v1721_v18 = vld [vmem:[#allocation5_spill] sm:$0xff] }
  0x98   : > { %384 = vmax.xlane.f32.xlu1 %v1376_v27  ;;  %446 = vmax.xlane.f32.xlu0 %v1379_v32 }
  0x9c   : > { %449 = vmax.xlane.f32.xlu0 %v1386_v46  ;;  %452 = vmax.xlane.f32.xlu1 %v1389_v35 }
  0xad   : > { %v210_v21 = vpop.xlane.xlu1 %209  ;;  %v204_v22 = vpop.xlane.xlu0 %203 }
  0xae   : > { %v487_v29 = vrot.slane %v210_v21, %v1392_v60  ;;  %v475_v34 = vrot.slane %v204_v22, %v1383_v36 }
  0xb1   : > { %v213_v50 = vpop.xlane.xlu1 %212  ;;  %v207_v10 = vpop.xlane.xlu0 %206 }
  0xb2   : > { %v494_v15 = vrot.slane %v213_v50, %v1402_v48  ;;  %v480_v16 = vrot.slane %v207_v10, %v1410_v53 }
  0xb4   : > { %v482_v17 = vsel %vm481_vm1, %v480_v16, %v475_v34 }
  0xb5   : > { %v489_v19 = vsel %vm488_vm2, %v487_v29, %v482_v17  ;;  %v219_v25 = vpop.xlane.xlu1 %218  ;;  %v216_v37 = vpop.xlane.xlu0 %215 }
  0xb6   : > { %v508_v38 = vrot.slane %v219_v25, %v1413_v63  ;;  %v496_v39 = vsel %vm495_vm3, %v494_v15, %v489_v19  ;;  %v501_v41 = vrot.slane %v216_v37, %v1419_v4 }
  0xb8   : > { %v503_v42 = vsel %vm502_vm4, %v501_v41, %v496_v39 }
  0xb9   : > { %v225_v43 = vpop.xlane.xlu1 %224  ;;  %v510_v45 = vsel %vm509_vm5, %v508_v38, %v503_v42  ;;  %v222_v49 = vpop.xlane.xlu0 %221 }
  0xba   : > { %v522_v54 = vrot.slane %v225_v43, %v1424_v0  ;;  %v515_v56 = vrot.slane %v222_v49, %v1430_v23 }
  0xbc   : > { %v517_v57 = vsel %vm516_vm6, %v515_v56, %v510_v45 }
  0xbd   : > { %v231_v2 = vpop.xlane.xlu1 %230  ;;  %v524_v30 = vsel %vm523_vm7, %v522_v54, %v517_v57  ;;  %v228_v33 = vpop.xlane.xlu0 %227 }
  0xbe   : > { %v536_v59 = vrot.slane %v231_v2, %v1433_v9  ;;  %v529_v26 = vrot.slane %v228_v33, %v1721_v18 }
  0xc0   : > { %v531_v27 = vsel %vm530_vm8, %v529_v26, %v524_v30 }
  0xc1   : > { %v237_v32 = vpop.xlane.xlu1 %236  ;;  %v538_v46 = vsel %vm537_vm9, %v536_v59, %v531_v27  ;;  %v234_v35 = vpop.xlane.xlu0 %233 }
  0xc2   : > { %v550_v1 = vrot.slane %v237_v32, %v1446_v61  ;;  %v543_v12 = vrot.slane %v234_v35, %v1450_v3 }
  0xc4   : > { %v545_v62 = vsel %vm544_vm10, %v543_v12, %v538_v46 }
  0xc5   : > { %v243_v5 = vpop.xlane.xlu1 %242  ;;  %v552_v47 = vsel %vm551_vm11, %v550_v1, %v545_v62  ;;  %v240_v28 = vpop.xlane.xlu0 %239 }
  0xc6   : > { %v564_v6 = vrot.slane %v243_v5, %v1722_v44  ;;  %v557_v55 = vrot.slane %v240_v28, %v1457_v40 }
  0xc8   : > { %v559_v52 = vsel %vm558_vm12, %v557_v55, %v552_v47 }
  0xc9   : > { %v249_v58 = vpop.xlane.xlu1 %248  ;;  %v566_v20 = vsel %vm565_vm13, %v564_v6, %v559_v52  ;;  %v246_v7 = vpop.xlane.xlu0 %245 }
  0xca   : > { %v578_v8 = vrot.slane %v249_v58, %v1470_v31  ;;  %v571_v11 = vrot.slane %v246_v7, %v1463_v24 }
  0xcc   : > { %v573_v14 = vsel %vm572_vm14, %v571_v11, %v566_v20 }
  0xcd   : > { %v1565_v13 = vsel %vm579_vm15, %v578_v8, %v573_v14  ;;  %v275_v51 = vpop.xlane.xlu1 %274  ;;  %v272_v21 = vpop.xlane.xlu0 %271 }
  0xce   : > { %v605_v22 = vrot.slane %v275_v51, %v1410_v53  ;;  %v601_v29 = vrot.slane %v272_v21, %v1383_v36 }
  0xd0   : > { %v606_v34 = vsel %vm481_vm1, %v605_v22, %v601_v29 }
  0xd1   : > { %v340_v50 = vpop.xlane.xlu1 %339  ;;  %v278_v10 = vpop.xlane.xlu0 %277 }
  0xd2   : > { %v697_v15 = vrot.slane %v340_v50, %v1383_v36  ;;  %v610_v16 = vrot.slane %v278_v10, %v1392_v60 }
  0xd4   : > { %v611_v17 = vsel %vm488_vm2, %v610_v16, %v606_v34 }
  0xd5   : > { %v281_v19 = vpop.xlane.xlu1 %280  ;;  %v343_v25 = vpop.xlane.xlu0 %342 }
  0xd6   : > { %v615_v37 = vrot.slane %v281_v19, %v1402_v48  ;;  %v701_v38 = vrot.slane %v343_v25, %v1410_v53 }
  0xd8   : > { %v616_v39 = vsel %vm495_vm3, %v615_v37, %v611_v17  ;;  %v702_v41 = vsel %vm481_vm1, %v701_v38, %v697_v15 }
  0xd9   : > { %v408_v42 = vpop.xlane.xlu1 %407  ;;  %v346_v43 = vpop.xlane.xlu0 %345 }
  0xda   : > { %v793_v45 = vrot.slane %v408_v42, %v1383_v36  ;;  %v706_v49 = vrot.slane %v346_v43, %v1392_v60 }
  0xdc   : > { %v707_v54 = vsel %vm488_vm2, %v706_v49, %v702_v41 }
  0xdd   : > { %v284_v56 = vpop.xlane.xlu1 %283  ;;  %v411_v57 = vpop.xlane.xlu0 %410 }
  0xde   : > { %v620_v2 = vrot.slane %v284_v56, %v1419_v4  ;;  %v797_v30 = vrot.slane %v411_v57, %v1410_v53 }
  0xe0   : > { %v621_v33 = vsel %vm502_vm4, %v620_v2, %v616_v39  ;;  %v798_v59 = vsel %vm481_vm1, %v797_v30, %v793_v45  ;;  %vm872_vm1 = vcmask 1041408  }
  0xe1   : > { %v414_v26 = vpop.xlane.xlu1 %413  ;;  %v349_v27 = vpop.xlane.xlu0 %348 }
  0xe2   : > { %v802_v32 = vrot.slane %v414_v26, %v1392_v60  ;;  %v711_v36 = vrot.slane %v349_v27, %v1402_v48 }
  0xe4   : > { %v803_v46 = vsel %vm488_vm2, %v802_v32, %v798_v59  ;;  %v712_v35 = vsel %vm495_vm3, %v711_v36, %v707_v54  ;;  %vm874_vm2 = vcmask 1042432  }
  0xe5   : > { %v352_v1 = vpop.xlane.xlu1 %351  ;;  %v287_v12 = vpop.xlane.xlu0 %286 }
  0xe6   : > { %v716_v62 = vrot.slane %v352_v1, %v1419_v4  ;;  %v625_v53 = vrot.slane %v287_v12, %v1413_v63 }
  0xe8   : > { %v717_v5 = vsel %vm502_vm4, %v716_v62, %v712_v35  ;;  %v626_v47 = vsel %vm509_vm5, %v625_v53, %v621_v33 }
  0xe9   : > { %v290_v28 = vpop.xlane.xlu1 %289  ;;  %v417_v6 = vpop.xlane.xlu0 %416 }
  0xea   : > { %v630_v60 = vrot.slane %v290_v28, %v1430_v23  ;;  %v807_v55 = vrot.slane %v417_v6, %v1402_v48 }
  0xec   : > { %v631_v52 = vsel %vm516_vm6, %v630_v60, %v626_v47  ;;  %v808_v58 = vsel %vm495_vm3, %v807_v55, %v803_v46 }
  0xed   : > { %v420_v20 = vpop.xlane.xlu1 %419  ;;  %v355_v7 = vpop.xlane.xlu0 %354 }
  0xee   : > { %v812_v8 = vrot.slane %v420_v20, %v1419_v4  ;;  %v721_v11 = vrot.slane %v355_v7, %v1413_v63 }
  0xf0   : > { %v813_v14 = vsel %vm502_vm4, %v812_v8, %v808_v58  ;;  %v722_v51 = vsel %vm509_vm5, %v721_v11, %v717_v5 }
  0xf1   : > { %v358_v21 = vpop.xlane.xlu1 %357  ;;  %v293_v22 = vpop.xlane.xlu0 %292 }
  0xf2   : > { %v726_v29 = vrot.slane %v358_v21, %v1430_v23  ;;  %v635_v48 = vrot.slane %v293_v22, %v1424_v0 }
  0xf4   : > { %v727_v34 = vsel %vm516_vm6, %v726_v29, %v722_v51  ;;  %v636_v50 = vsel %vm523_vm7, %v635_v48, %v631_v52 }
  0xf5   : > { %v296_v10 = vpop.xlane.xlu1 %295  ;;  %v423_v15 = vpop.xlane.xlu0 %422 }
  0xf6   : > { %v640_v4 = vrot.slane %v296_v10, %v1721_v18  ;;  %v817_v16 = vrot.slane %v423_v15, %v1413_v63 }
  0xf8   : > { %v641_v17 = vsel %vm530_vm8, %v640_v4, %v636_v50  ;;  %v818_v19 = vsel %vm509_vm5, %v817_v16, %v813_v14 }
  0xf9   : > { %v426_v25 = vpop.xlane.xlu1 %425  ;;  %v361_v37 = vpop.xlane.xlu0 %360 }
  0xfa   : > { %v822_v38 = vrot.slane %v426_v25, %v1430_v23  ;;  %v731_v39 = vrot.slane %v361_v37, %v1424_v0 }
  0xfc   : > { %v823_v41 = vsel %vm516_vm6, %v822_v38, %v818_v19  ;;  %v732_v42 = vsel %vm523_vm7, %v731_v39, %v727_v34 }
  0xfd   : > { %v364_v43 = vpop.xlane.xlu1 %363  ;;  %v299_v45 = vpop.xlane.xlu0 %298 }
  0xfe   : > { %v736_v49 = vrot.slane %v364_v43, %v1721_v18  ;;  %v645_v63 = vrot.slane %v299_v45, %v1433_v9 }
 0x100   : > { %v737_v54 = vsel %vm530_vm8, %v736_v49, %v732_v42  ;;  %v646_v56 = vsel %vm537_vm9, %v645_v63, %v641_v17 }
 0x101   : > { %v302_v57 = vpop.xlane.xlu1 %301  ;;  %v429_v2 = vpop.xlane.xlu0 %428 }
 0x102   : > { %v650_v23 = vrot.slane %v302_v57, %v1450_v3  ;;  %v827_v30 = vrot.slane %v429_v2, %v1424_v0 }
 0x104   : > { %v651_v33 = vsel %vm544_vm10, %v650_v23, %v646_v56  ;;  %v828_v59 = vsel %vm523_vm7, %v827_v30, %v823_v41 }
 0x105   : > { %v432_v26 = vpop.xlane.xlu1 %431  ;;  %v367_v27 = vpop.xlane.xlu0 %366 }
 0x106   : > { %v832_v32 = vrot.slane %v432_v26, %v1721_v18  ;;  %v741_v36 = vrot.slane %v367_v27, %v1433_v9 }
 0x108   : > { %v833_v46 = vsel %vm530_vm8, %v832_v32, %v828_v59  ;;  %v742_v35 = vsel %vm537_vm9, %v741_v36, %v737_v54 }
 0x109   : > { %v370_v1 = vpop.xlane.xlu1 %369  ;;  %v305_v12 = vpop.xlane.xlu0 %304 }
 0x10a   : > { %v746_v62 = vrot.slane %v370_v1, %v1450_v3  ;;  %v655_v0 = vrot.slane %v305_v12, %v1446_v61 }
 0x10c   : > { %v747_v53 = vsel %vm544_vm10, %v746_v62, %v742_v35  ;;  %v656_v5 = vsel %vm551_vm11, %v655_v0, %v651_v33 }
 0x10d   : > { %v308_v47 = vpop.xlane.xlu1 %307  ;;  %v435_v28 = vpop.xlane.xlu0 %434 }
 0x10e   : > { %v660_v18 = vrot.slane %v308_v47, %v1457_v40  ;;  %v837_v6 = vrot.slane %v435_v28, %v1433_v9 }
 0x110   : > { %v661_v60 = vsel %vm558_vm12, %v660_v18, %v656_v5  ;;  %v838_v55 = vsel %vm537_vm9, %v837_v6, %v833_v46 }
 0x111   : > { %v438_v52 = vpop.xlane.xlu1 %437  ;;  %v373_v58 = vpop.xlane.xlu0 %372 }
 0x112   : > { %v842_v20 = vrot.slane %v438_v52, %v1450_v3  ;;  %v751_v7 = vrot.slane %v373_v58, %v1446_v61 }
 0x114   : > { %v843_v8 = vsel %vm544_vm10, %v842_v20, %v838_v55  ;;  %v752_v11 = vsel %vm551_vm11, %v751_v7, %v747_v53 }
 0x115   : > { %v376_v14 = vpop.xlane.xlu1 %375  ;;  %v311_v51 = vpop.xlane.xlu0 %310 }
 0x116   : > { %v756_v21 = vrot.slane %v376_v14, %v1457_v40  ;;  %v665_v9 = vrot.slane %v311_v51, %v1722_v44 }
 0x118   : > { %v757_v22 = vsel %vm558_vm12, %v756_v21, %v752_v11  ;;  %v666_v29 = vsel %vm565_vm13, %v665_v9, %v661_v60 }
 0x119   : > { %v314_v48 = vpop.xlane.xlu1 %313  ;;  %v441_v34 = vpop.xlane.xlu0 %440 }
 0x11a   : > { %v670_v3 = vrot.slane %v314_v48, %v1463_v24  ;;  %v847_v50 = vrot.slane %v441_v34, %v1446_v61 }
 0x11c   : > { %v671_v10 = vsel %vm572_vm14, %v670_v3, %v666_v29  ;;  %v848_v15 = vsel %vm551_vm11, %v847_v50, %v843_v8 }
 0x11d   : > { %v444_v4 = vpop.xlane.xlu1 %443  ;;  %v379_v16 = vpop.xlane.xlu0 %378 }
 0x11e   : > { %v852_v17 = vrot.slane %v444_v4, %v1457_v40  ;;  %v761_v19 = vrot.slane %v379_v16, %v1722_v44 }
 0x120   : > { %v853_v25 = vsel %vm558_vm12, %v852_v17, %v848_v15  ;;  %v762_v37 = vsel %vm565_vm13, %v761_v19, %v757_v22 }
 0x121   : > { %v382_v38 = vpop.xlane.xlu1 %381  ;;  %v317_v39 = vpop.xlane.xlu0 %316 }
 0x122   : > { %v766_v61 = vrot.slane %v382_v38, %v1463_v24  ;;  %v675_v41 = vrot.slane %v317_v39, %v1470_v31 }
 0x124   : > { %v767_v42 = vsel %vm572_vm14, %v766_v61, %v762_v37  ;;  %v676_v43 = vsel %vm579_vm15, %v675_v41, %v671_v10 }
 0x125   : > { %v871_v40 = vsel %vm870_vm0, %v1565_v13, %v676_v43  ;;  %v385_v45 = vpop.xlane.xlu1 %384  ;;  %v447_v49 = vpop.xlane.xlu0 %446 }
 0x126   : > { %v771_v63 = vrot.slane %v385_v45, %v1470_v31  ;;  %v857_v54 = vrot.slane %v447_v49, %v1722_v44 }
 0x128   : > { %v772_v56 = vsel %vm579_vm15, %v771_v63, %v767_v42  ;;  %v858_v57 = vsel %vm565_vm13, %v857_v54, %v853_v25 }
 0x129   : > { %v450_v2 = vpop.xlane.xlu0 %449  ;;  %v453_v23 = vpop.xlane.xlu1 %452  ;;  %v873_v30 = vsel %vm872_vm1, %v871_v40, %v772_v56 }
 0x12a   : > { %v862_v33 = vrot.slane %v450_v2, %v1463_v24  ;;  %v867_v13 = vrot.slane %v453_v23, %v1470_v31 }
 0x12c   : > { %v863_v44 = vsel %vm572_vm14, %v862_v33, %v858_v57 }
 0x12d   : > { %v868_v59 = vsel %vm579_vm15, %v867_v13, %v863_v44 }
 0x12e   : > { %v875_v24 = vsel %vm874_vm2, %v873_v30, %v868_v59 }
 0x12f   : > { %876 = vst [vmem:[%s149_s3] sm:$0xf] %v875_v24 }
 0x130   : > { %1013 = shalt.err (!%p1010_p3)
}
 0x131   : > { %s1014_s21 = scalar_lea.hbm %s1668_s7, 64  ;;  %s1018_s24 = scalar_lea.hbm %s1714_s2, 128 }
 0x132   : > { %p1015_p4 = scmp.ne.s32.totalorder %s1668_s7, %s1014_s21  ;;  %p1019_p9 = scmp.lt.u32.totalorder %s1668_s7, %s1714_s2 }
 0x133   : > { %p1020_p10 = scmp.lt.u32.totalorder %s1018_s24, %s1014_s21  ;;  %p1022_p12 = scmp.lt.u32.totalorder %s1014_s21, %s1668_s7 }
 0x134   : > { %p1016_p7 = pnand %p1015_p4, %p1118_p5 }
 0x135   : > { %p1021_p11 = por %p1020_p10, %p1019_p9 }
 0x136   : > { %p1017_p8 = pneg %p1016_p7 }
 0x137   : > { %p1023_p13 = por %p1022_p12, %p1021_p11 }
 0x139   : > { %p1024_p0 = pnand %p1023_p13, %p1017_p8 }
 0x13b   : > { %1027 = shalt.err (!%p1024_p0)
}
 0x13c   : > { %961 = dma.vmem_to_hbm [thread:$0]  (%p1118_p5), %s1670_s4, 64, %s1668_s7, %s878_s8  }
 0x13d PF: > { %p967_p1 = scmp.ge.s32.totalorder %s1062_s12, 2  ;;  %s903_s27 = sand.u32 1, %s1050_s9  }
 0x13e   : > { %s904_s28 = scalar_lea.sflag [#allocation3], %s903_s27 }
 0x13f   : > { %p964_p2 = pnand %p967_p1, %p1122_p6 }
 0x141   : > { %1045 = dma.done.wait (!%p964_p2), %s904_s28, 64  }
 0x142   : > { %1047 = vsyncadd (!%p964_p2), %s904_s28, 4294967232  ;;  %p12_p3 = scmp.ge.s32.totalorder %s1105_s15, 4   ;;  %s1723_s9 = smov %s1054_s10 }
 0x143   : > { %s1724_s10 = smov %s1058_s11  ;;  %s1725_s11 = smov %s1116_s18 }
 0x144   : > { %s1726_s12 = smov %s1105_s15  ;;  %14 = sbr.rel (!%p12_p3) target bundleno = 3 (0x3), region = 63 }
 0x14b   :  { %909 = vsyncpa [#allocation3], 1 }
 0x14c   :  { %911 = vsyncpa [#allocation3 + $0x1], 1 }

</bundles_post_ra>
